<compile_context>
chip_gen: v6e
topology: v6e:2x2x1
jax: 0.10.0
libtpu: 0.0.40
codegen_flags: <defaults>
</compile_context>

<pallas_src>
import functools

import jax
import jax.numpy as jnp
from jax.experimental import pallas as pl
from jax.experimental.pallas import tpu as pltpu


def _contrastive_kernel(x1_ref, x2_ref, lbl_ref, out_ref, *,
                        margin: float, total_rows: int,
                        tiles_per_core: int, block_rows: int):
    c = pl.program_id(0)          # batch-shard axis ("parallel")
    i = pl.program_id(1)          # reduction axis over row tiles ("arbitrary")

    @pl.when(i == 0)
    def _():
        out_ref[...] = jnp.zeros_like(out_ref)

    # Inputs stream in their native dtype; upcast on the VPU after the load.
    x1 = x1_ref[...].astype(jnp.float32)        # (tb, D)
    x2 = x2_ref[...].astype(jnp.float32)        # (tb, D)
    lbl = lbl_ref[...].astype(jnp.float32)      # (tb, 1)

    diff = x1 - x2
    sq = jnp.sum(diff * diff, axis=1, keepdims=True)    # (tb, 1) = ||x1-x2||^2
    dist = jnp.sqrt(sq)                                  # euclidean distance
    hinge = jnp.maximum(jnp.float32(margin) - dist, 0.0)
    # (1-l)*dist^2 + l*hinge^2  ==  sq + l*(hinge^2 - sq)   (reuses sq)
    per_sample = sq + lbl * (hinge * hinge - sq)         # (tb, 1)

    # Mask the ragged tail: feature inputs are NOT padded in HBM, and surplus
    # grid steps replay the (clamped) last block.  Rows with global index
    # >= total_rows contribute exactly 0.  Must be a select (jnp.where), not a
    # multiplicative mask, because out-of-bounds rows contain unspecified data.
    base = (c * tiles_per_core + i) * block_rows
    row = base + jax.lax.broadcasted_iota(jnp.int32, per_sample.shape, 0)
    per_sample = jnp.where(row < total_rows, per_sample, 0.0)

    # Collapse to a scalar every step (XLU slot is idle; kernel is HBM-bound)
    # and accumulate into the resident (1, 1, 1) output block — no scratch.
    out_ref[...] += jnp.sum(per_sample, axis=0, keepdims=True)[None]


def _chip_config():
    """Per-generation defaults: (num_cores, per-input block bytes, vmem limit)."""
    kind = ""
    try:
        kind = jax.devices()[0].device_kind.lower()
    except Exception:
        pass
    if "v7" in kind or "tpu7" in kind:
        # 2 TensorCores, ~3.2 TB/s HBM, 64 MiB physical VMEM per TC.
        return dict(num_cores=2, block_bytes=3 << 20, vmem_limit=48 << 20)
    if "v6" in kind:
        # Single TC, ~1.4 TB/s HBM, 128 MiB physical VMEM.
        return dict(num_cores=1, block_bytes=2 << 20, vmem_limit=64 << 20)
    if "v5e" in kind or "v5 lite" in kind or "v5lite" in kind:
        # Single TC, ~0.82 TB/s HBM, 16 MiB *default scoped* VMEM -> raise it.
        return dict(num_cores=1, block_bytes=3 << 19, vmem_limit=32 << 20)
    # Unknown chip: conservative defaults, don't touch the scoped VMEM limit.
    return dict(num_cores=1, block_bytes=1 << 20, vmem_limit=None)


def contrastive_loss_pallas(output1, output2, label, *, margin=1.0,
                            similarity_type="euclidean",
                            block_rows=None, num_cores=None):
    """Contrastive loss forward, matching the PyTorch reference.

    output1, output2: (B, D) arrays (any float dtype; streamed natively)
    label:            (B,)   array (0/1)
    returns scalar float32
    """
    if similarity_type != "euclidean":
        # TODO(synk): cosine-similarity branch (F.cosine_similarity) not implemented.
        raise NotImplementedError("only similarity_type='euclidean' is supported")

    B, D = output1.shape
    cfg = _chip_config()
    if num_cores is None:
        num_cores = cfg["num_cores"]
    num_cores = max(1, int(num_cores))

    itemsize = max(jnp.dtype(output1.dtype).itemsize,
                   jnp.dtype(output2.dtype).itemsize)
    Dp = pl.cdiv(D, 128) * 128                      # lane-padded feature width

    # --- tile sizing (no row cap; bounded by HBM block budget AND VMEM) -----
    if block_rows is None:
        tb_goal = cfg["block_bytes"] // max(1, D * itemsize)
        # Double-buffered VMEM bytes per row:
        #   2 feature blocks (native dtype, lane-padded) + 1 label block
        #   (f32, lane-padded to 128 lanes), each x2 pipeline buffers.
        per_row_vmem = 2 * (2 * Dp * itemsize + 128 * 4)
        vmem_budget = (cfg["vmem_limit"] or (16 << 20)) // 2   # leave headroom
        tb = min(tb_goal, max(8, vmem_budget // per_row_vmem))
    else:
        tb = max(1, int(block_rows))

    per_core_rows = pl.cdiv(B, num_cores)
    if B < 8:
        tb = B                                       # block dim == full array dim
    else:
        row_cap = max(8, (per_core_rows // 8) * 8)   # don't tile past the batch
        tb = max(8, min((tb // 8) * 8, row_cap))

    Tt = pl.cdiv(B, tb)                              # blocks actually covering B
    T = pl.cdiv(Tt, num_cores)                       # tiles per core (reduction)
    last_block = Tt - 1

    # Only the tiny label vector is padded to whole blocks; the big feature
    # matrices are streamed unpadded and the ragged tail is masked in-kernel.
    label2d = label.reshape(B, 1).astype(jnp.float32)
    Lp = Tt * tb
    if Lp != B:
        label2d = jnp.pad(label2d, ((0, Lp - B), (0, 0)))

    def feat_map(c, i):
        # Clamp surplus grid steps onto the last valid block (their
        # contribution is zeroed in-kernel via the row mask).
        return (jnp.minimum(c * T + i, last_block), 0)

    kernel = functools.partial(_contrastive_kernel, margin=float(margin),
                               total_rows=B, tiles_per_core=T, block_rows=tb)

    bytes_accessed = int(B * D * itemsize * 2 + Lp * 4 + num_cores * 4)
    cost = pl.CostEstimate(flops=4 * B * D, transcendentals=B,
                           bytes_accessed=bytes_accessed)

    cp_kwargs = dict(dimension_semantics=("parallel", "arbitrary"))
    if cfg["vmem_limit"] is not None:
        cp_kwargs["vmem_limit_bytes"] = int(cfg["vmem_limit"])

    partials = pl.pallas_call(
        kernel,
        out_shape=jax.ShapeDtypeStruct((num_cores, 1, 1), jnp.float32),
        grid_spec=pltpu.PrefetchScalarGridSpec(
            num_scalar_prefetch=0,
            grid=(num_cores, T),
            in_specs=[
                pl.BlockSpec((tb, D), feat_map),
                pl.BlockSpec((tb, D), feat_map),
                pl.BlockSpec((tb, 1), feat_map),
            ],
            out_specs=pl.BlockSpec((1, 1, 1), lambda c, i: (c, 0, 0)),
        ),
        compiler_params=pltpu.CompilerParams(**cp_kwargs),
        cost_estimate=cost,
    )(output1, output2, label2d)

    return jnp.sum(partials) / jnp.float32(B)


def contrastive_loss_ref(output1, output2, label, margin=1.0):
    dist = jnp.sqrt(jnp.sum((output1.astype(jnp.float32)
                             - output2.astype(jnp.float32)) ** 2, axis=1))
    hinge = jnp.maximum(margin - dist, 0.0)
    return jnp.mean((1.0 - label) * dist ** 2 + label * hinge ** 2)


if __name__ == "__main__":
    key = jax.random.PRNGKey(0)
    ks = jax.random.split(key, 9)

    # Case 1: small f32 batch.
    B, D = 16, 128
    o1 = jax.random.normal(ks[0], (B, D), dtype=jnp.float32)
    o2 = jax.random.normal(ks[1], (B, D), dtype=jnp.float32)
    lbl = jax.random.bernoulli(ks[2], p=0.5, shape=(B,)).astype(jnp.float32)
    loss = jax.block_until_ready(contrastive_loss_pallas(o1, o2, lbl, margin=1.0))
    ref = contrastive_loss_ref(o1, o2, lbl, margin=1.0)
    assert jnp.allclose(loss, ref, rtol=1e-4, atol=1e-4), (loss, ref)

    # Case 2: ragged batch in bf16 (exercises unpadded features + tail mask).
    B2, D2 = 20, 64
    o1b = jax.random.normal(ks[3], (B2, D2), dtype=jnp.bfloat16)
    o2b = jax.random.normal(ks[4], (B2, D2), dtype=jnp.bfloat16)
    lblb = jax.random.bernoulli(ks[5], p=0.5, shape=(B2,)).astype(jnp.float32)
    loss2 = jax.block_until_ready(
        contrastive_loss_pallas(o1b, o2b, lblb, margin=1.0))
    ref2 = contrastive_loss_ref(o1b, o2b, lblb, margin=1.0)
    assert jnp.allclose(loss2, ref2, rtol=1e-4, atol=1e-4), (loss2, ref2)

    # Case 3: multi-tile ragged batch with a forced small block, exercising the
    # clamped index_map + in-kernel row masking across several grid steps.
    B3, D3 = 300, 32
    o1c = jax.random.normal(ks[6], (B3, D3), dtype=jnp.float32)
    o2c = jax.random.normal(ks[7], (B3, D3), dtype=jnp.float32)
    lblc = jax.random.bernoulli(ks[8], p=0.5, shape=(B3,)).astype(jnp.float32)
    loss3 = jax.block_until_ready(
        contrastive_loss_pallas(o1c, o2c, lblc, margin=1.0, block_rows=64))
    ref3 = contrastive_loss_ref(o1c, o2c, lblc, margin=1.0)
    assert jnp.allclose(loss3, ref3, rtol=1e-4, atol=1e-4), (loss3, ref3)

    print("KERNEL_OK")
</pallas_src>

<mosaic_0001>
module attributes {stable_mosaic.version = 11 : i64} {
  func.func @_contrastive_kernel(%arg0: i32, %arg1: i32, %arg2: memref<16x128xf32, #tpu.memory_space<vmem>>, %arg3: memref<16x128xf32, #tpu.memory_space<vmem>>, %arg4: memref<16x1xf32, #tpu.memory_space<vmem>>, %arg5: memref<1x1x1xf32, #tpu.memory_space<vmem>>) attributes {dimension_semantics = [#tpu.dimension_semantics<parallel>, #tpu.dimension_semantics<arbitrary>], iteration_bounds = array<i64: 1, 1>, scalar_prefetch = 0 : i64, scratch_operands = 0 : i64, tpu.core_type = #tpu.core_type<tc>, window_params = [{transform_indices = @transform_0, window_bounds = array<i64: 16, 128>}, {transform_indices = @transform_1, window_bounds = array<i64: 16, 128>}, {transform_indices = @transform_2, window_bounds = array<i64: 16, 1>}, {transform_indices = @transform_3, window_bounds = array<i64: 1, 1, 1>}]} {
    %c0_i32 = arith.constant 0 : i32
    %0 = arith.cmpi eq, %arg1, %c0_i32 : i32
    %1 = arith.extui %0 : i1 to i32
    %c0_i32_0 = arith.constant 0 : i32
    %2 = arith.cmpi ne, %1, %c0_i32_0 : i32
    scf.if %2 {
      %cst_17 = arith.constant 0.000000e+00 : f32
      %35 = vector.broadcast %cst_17 : f32 to vector<1x1x1xf32>
      %c0_18 = arith.constant 0 : index
      %c0_19 = arith.constant 0 : index
      %c0_20 = arith.constant 0 : index
      %36 = vector.load %arg5[%c0_18, %c0_19, %c0_20] : memref<1x1x1xf32, #tpu.memory_space<vmem>>, vector<1x1x1xf32>
      tpu.vector_store %arg5[%c0_18, %c0_19, %c0_20], %35 {strides = array<i32>} : memref<1x1x1xf32, #tpu.memory_space<vmem>>, vector<1x1x1xf32>,
    } else {
    }
    %c0 = arith.constant 0 : index
    %c0_1 = arith.constant 0 : index
    %3 = vector.load %arg2[%c0, %c0_1] : memref<16x128xf32, #tpu.memory_space<vmem>>, vector<16x128xf32>
    %c0_2 = arith.constant 0 : index
    %c0_3 = arith.constant 0 : index
    %4 = vector.load %arg3[%c0_2, %c0_3] : memref<16x128xf32, #tpu.memory_space<vmem>>, vector<16x128xf32>
    %c0_4 = arith.constant 0 : index
    %c0_5 = arith.constant 0 : index
    %5 = vector.load %arg4[%c0_4, %c0_5] : memref<16x1xf32, #tpu.memory_space<vmem>>, vector<16x1xf32>
    %6 = arith.subf %3, %4 : vector<16x128xf32>
    %7 = arith.mulf %6, %6 : vector<16x128xf32>
    %cst = arith.constant dense<0.000000e+00> : vector<16xf32>
    %8 = vector.multi_reduction <add>, %7, %cst [1] : vector<16x128xf32> to vector<16xf32>
    %9 = vector.shape_cast %8 : vector<16xf32> to vector<16x1xf32>
    %10 = math.sqrt %9 : vector<16x1xf32>
    %cst_6 = arith.constant 1.000000e+00 : f32
    %11 = vector.broadcast %cst_6 : f32 to vector<16x1xf32>
    %12 = arith.subf %11, %10 : vector<16x1xf32>
    %cst_7 = arith.constant 0.000000e+00 : f32
    %13 = vector.broadcast %cst_7 : f32 to vector<16x1xf32>
    %14 = arith.maximumf %12, %13 : vector<16x1xf32>
    %15 = arith.mulf %14, %14 : vector<16x1xf32>
    %16 = arith.subf %15, %9 : vector<16x1xf32>
    %17 = arith.mulf %5, %16 : vector<16x1xf32>
    %18 = arith.addf %9, %17 : vector<16x1xf32>
    %c1_i32 = arith.constant 1 : i32
    %19 = arith.muli %arg0, %c1_i32 : i32
    %20 = arith.addi %19, %arg1 : i32
    %c16_i32 = arith.constant 16 : i32
    %21 = arith.muli %20, %c16_i32 : i32
    %22 = tpu.iota {dimensions = array<i32: 0>} : vector<16x1xi32>
    %23 = vector.broadcast %21 : i32 to vector<16x1xi32>
    %24 = arith.addi %23, %22 : vector<16x1xi32>
    %c16_i32_8 = arith.constant 16 : i32
    %25 = vector.broadcast %c16_i32_8 : i32 to vector<16x1xi32>
    %26 = arith.cmpi slt, %24, %25 : vector<16x1xi32>
    %cst_9 = arith.constant 0.000000e+00 : f32
    %27 = vector.broadcast %cst_9 : f32 to vector<16x1xf32>
    %28 = arith.select %26, %18, %27 : vector<16x1xi1>, vector<16x1xf32>
    %c0_10 = arith.constant 0 : index
    %c0_11 = arith.constant 0 : index
    %c0_12 = arith.constant 0 : index
    %29 = vector.load %arg5[%c0_10, %c0_11, %c0_12] : memref<1x1x1xf32, #tpu.memory_space<vmem>>, vector<1x1x1xf32>
    %cst_13 = arith.constant dense<0.000000e+00> : vector<1xf32>
    %30 = vector.multi_reduction <add>, %28, %cst_13 [0] : vector<16x1xf32> to vector<1xf32>
    %31 = vector.shape_cast %30 : vector<1xf32> to vector<1x1xf32>
    %32 = vector.shape_cast %31 : vector<1x1xf32> to vector<1x1x1xf32>
    %33 = arith.addf %29, %32 : vector<1x1x1xf32>
    %c0_14 = arith.constant 0 : index
    %c0_15 = arith.constant 0 : index
    %c0_16 = arith.constant 0 : index
    %34 = vector.load %arg5[%c0_14, %c0_15, %c0_16] : memref<1x1x1xf32, #tpu.memory_space<vmem>>, vector<1x1x1xf32>
    tpu.vector_store %arg5[%c0_14, %c0_15, %c0_16], %33 {strides = array<i32>} : memref<1x1x1xf32, #tpu.memory_space<vmem>>, vector<1x1x1xf32>,
    return
  }
  func.func @transform_0(%arg0: i32, %arg1: i32) -> (i32, i32) {
    %c1_i32 = arith.constant 1 : i32
    %0 = arith.muli %arg0, %c1_i32 : i32
    %1 = arith.addi %0, %arg1 : i32
    %c0_i32 = arith.constant 0 : i32
    %2 = arith.minsi %1, %c0_i32 : i32
    %c0_i32_0 = arith.constant 0 : i32
    %c0_i32_1 = arith.constant 0 : i32
    return %2, %c0_i32_0 : i32, i32
  }
  func.func @transform_1(%arg0: i32, %arg1: i32) -> (i32, i32) {
    %c1_i32 = arith.constant 1 : i32
    %0 = arith.muli %arg0, %c1_i32 : i32
    %1 = arith.addi %0, %arg1 : i32
    %c0_i32 = arith.constant 0 : i32
    %2 = arith.minsi %1, %c0_i32 : i32
    %c0_i32_0 = arith.constant 0 : i32
    %c0_i32_1 = arith.constant 0 : i32
    return %2, %c0_i32_0 : i32, i32
  }
  func.func @transform_2(%arg0: i32, %arg1: i32) -> (i32, i32) {
    %c1_i32 = arith.constant 1 : i32
    %0 = arith.muli %arg0, %c1_i32 : i32
    %1 = arith.addi %0, %arg1 : i32
    %c0_i32 = arith.constant 0 : i32
    %2 = arith.minsi %1, %c0_i32 : i32
    %c0_i32_0 = arith.constant 0 : i32
    %c0_i32_1 = arith.constant 0 : i32
    return %2, %c0_i32_0 : i32, i32
  }
  func.func @transform_3(%arg0: i32, %arg1: i32) -> (i32, i32, i32) {
    %c0_i32 = arith.constant 0 : i32
    %c0_i32_0 = arith.constant 0 : i32
    %c0_i32_1 = arith.constant 0 : i32
    return %arg0, %c0_i32, %c0_i32_0 : i32, i32, i32
  }
}

</mosaic_0001>

<bundles_post_ra>
// kernel: tpu_custom_call.1
= control target key start
LH: loop header
LB: loop body
LE: loop exit
PB: predicated region body
PF: predicated region fallthrough
CT: control target
= control target key end

     0   :  { %8 = vsyncpa [#allocation3], 0  ;;  %s302_s0 = inlined_call_operand.vmem [shape: f32[16,128], index: 0, kind: input, shape index: {}]   ;;  %s303_s1 = inlined_call_operand.hbm [shape: f32[16,128], index: 1, kind: input, shape index: {}]   ;;  %s304_s2 = inlined_call_operand.vmem [shape: f32[16,1], index: 2, kind: input, shape index: {}]   ;;  %s305_s3 = inlined_call_operand.hbm [shape: f32[1,1,1], index: 3, kind: output, shape index: {}]  }
   0x1   :  { %9 = vsyncpa [#allocation4], 0  ;;  %s257_s12 = smov [#allocation2]  }
   0x2   :  { %s35_s13 = sshll.u32 %s257_s12, 4  ;;  %s36_s13 = int_to_ptr.vmem [resolvable:$true] %s35_s13 }
   0x3   :  { %s221_s14 = scalar_lea.vmem %s36_s13, 256  ;;  %p226_p1 = scmp.lt.s32.totalorder %s36_s13, %s36_s13 }
   0x4   :  { %p222_p0 = scmp.ne.s32.totalorder %s36_s13, %s221_s14  ;;  %p227_p2 = scmp.lt.s32.totalorder %s221_s14, %s221_s14 }
   0x6   :  { %p228_p3 = por %p227_p2, %p226_p1 }
   0x8   :  { %p229_p4 = pnand %p228_p3, %p222_p0 }
   0xa   :  { %232 = shalt.err (!%p229_p4)
}
   0xb   :  { %s258_s15 = smov 128   ;;  %s259_s16 = smov 8  }
   0xc   :  { %41 = dma.hbm_to_vmem [thread:$0]  %s303_s1, 256, %s36_s13, [#allocation3], %s258_s15, %s258_s15, %s259_s16  }
   0xd   :  { %253 = dma.done.wait [#allocation3], 256  }
   0xe   :  { %254 = vsyncadd [#allocation3], 4294967040  ;;  %v109_v0 = vld [vmem:[%s302_s0] sm:$0xff]  ;;  %v110_v2 = vld [vmem:[%s302_s0 + $0x8] sm:$0xff]  ;;  %vm107_vm0 = vcmask 0   ;;  %v260_v8 = vmov 0.0  }
   0xf   :  { %v111_v1 = vld [vmem:[#allocation2] sm:$0xff]  ;;  %v112_v4 = vld [vmem:[#allocation2 + $0x8] sm:$0xff]  ;;  %108 = vst.msk [vmem:[#allocation5] sm:$0x1] %vm107_vm0, %v260_v8  ;;  %vm162_vm5 = vcmask 7168   ;;  %s261_s25 = smov [#allocation5]  }
  0x10   :  { %v115_v3 = vsub.f32 %v109_v0, %v111_v1  ;;  %v116_v5 = vsub.f32 %v110_v2, %v112_v4  ;;  %v113_v25 = vld [vmem:[%s304_s2] sm:$0xff]  ;;  %v114_v30 = vld [vmem:[%s304_s2 + $0x8] sm:$0xff]  ;;  %s181_s26 = sshll.u32 %s261_s25, 4  ;;  %s182_s26 = int_to_ptr.vmem [resolvable:$true] %s181_s26 }
  0x11   :  { %s233_s2 = scalar_lea.vmem %s182_s26, 16  ;;  %s237_s27 = scalar_lea.vmem %s182_s26, 32 }
  0x12   :  { %v117_v6 = vmul.f32 %v115_v3, %v115_v3  ;;  %v118_v7 = vmul.f32 %v116_v5, %v116_v5  ;;  %p234_p5 = scmp.ne.s32.totalorder %s182_s26, %s233_s2  ;;  %p238_p6 = scmp.lt.s32.totalorder %s182_s26, %s182_s26 }
  0x13   :  { %p239_p7 = scmp.lt.s32.totalorder %s237_s27, %s233_s2 }
  0x14   :  { %119 = vadd.xlane.f32.xlu0 %v117_v6 }
  0x15   :  { %p240_p8 = por %p239_p7, %p238_p6 }
  0x16   :  { %v161_v43 = vld [vmem:[#allocation5] sm:$0x1] }
  0x17   :  { %p241_p9 = pnand %p240_p8, %p234_p5 }
  0x18   :  { %121 = vadd.xlane.f32.xlu0 %v118_v7 }
  0x9d   :  { %v120_v9 = vpop.xlane.xlu0 %119 }
  0x9e   :  { %209 = vrsqrt.f32 %v120_v9  ;;  %vm125_vm1 = vcmp.eq.f32.partialorder %v120_v9, inf  ;;  %v128_v13 = vand.u32 2147483648, %v120_v9  ;;  %vm127_vm2 = vcmp.eq.f32.partialorder %v120_v9, 0.0 }
  0xa1   :  { %v122_v10 = vpop.xlane.xlu0 %121 }
  0xa2   :  { %211 = vrsqrt.f32 %v122_v10  ;;  %vm132_vm3 = vcmp.eq.f32.partialorder %v122_v10, inf  ;;  %v135_v19 = vand.u32 2147483648, %v122_v10  ;;  %vm134_vm4 = vcmp.eq.f32.partialorder %v122_v10, 0.0 }
  0xab   :  { %v210_v11 = vpop.eup %209 }
  0xac   :  { %v124_v12 = vmul.f32 %v210_v11, %v120_v9 }
  0xae   :  { %v126_v14 = vsel %vm125_vm1, %v120_v9, %v124_v12 }
  0xaf   :  { %v212_v15 = vpop.eup %211  ;;  %v129_v16 = vsel %vm127_vm2, %v128_v13, %v126_v14 }
  0xb0   :  { %v137_v17 = vsub.f32 1.0, %v129_v16  ;;  %v131_v18 = vmul.f32 %v212_v15, %v122_v10 }
  0xb2   :  { %v139_v20 = vmax.f32 %v137_v17, 0.0  ;;  %v133_v21 = vsel %vm132_vm3, %v122_v10, %v131_v18 }
  0xb3   :  { %v136_v22 = vsel %vm134_vm4, %v135_v19, %v133_v21 }
  0xb4   :  { %v141_v23 = vmul.f32 %v139_v20, %v139_v20  ;;  %v138_v24 = vsub.f32 1.0, %v136_v22 }
  0xb6   :  { %v143_v26 = vsub.f32 %v141_v23, %v120_v9  ;;  %v140_v27 = vmax.f32 %v138_v24, 0.0 }
  0xb8   :  { %v145_v28 = vmul.f32 %v143_v26, %v113_v25  ;;  %v142_v29 = vmul.f32 %v140_v27, %v140_v27 }
  0xba   :  { %v144_v31 = vsub.f32 %v142_v29, %v122_v10  ;;  %v147_v32 = vadd.f32 %v145_v28, %v120_v9 }
  0xbc   :  { %v146_v33 = vmul.f32 %v144_v31, %v114_v30  ;;  %v163_v36 = vsel %vm162_vm5, %v147_v32, 0.0 }
  0xbe   :  { %v148_v34 = vadd.f32 %v146_v33, %v122_v10 }
  0xc0   :  { %v164_v35 = vsel %vm162_vm5, %v148_v34, 0.0 }
  0xc1   :  { %v165_v37 = vadd.f32 %v164_v35, %v163_v36 }
  0xc3   :  { %v166_v38 = vrot.slane %v165_v37, 4 }
  0xc5   :  { %v167_v39 = vadd.f32 %v166_v38, %v165_v37 }
  0xc7   :  { %v168_v40 = vrot.slane %v167_v39, 2 }
  0xc9   :  { %v169_v41 = vadd.f32 %v168_v40, %v167_v39 }
  0xcb   :  { %v170_v42 = vrot.slane %v169_v41, 1 }
  0xcd   :  { %v171_v44 = vadd.f32 %v170_v42, %v169_v41 }
  0xcf   :  { %v172_v45 = vadd.f32 %v171_v44, %v161_v43 }
  0xd1   :  { %174 = vst.msk [vmem:[#allocation5] sm:$0x1] %vm107_vm0, %v172_v45 }
  0xd2   :  { %244 = shalt.err (!%p241_p9)
}
  0xd3   :  { %184 = dma.vmem_to_hbm [thread:$0]  %s182_s26, 16, %s305_s3, [#allocation4]  }
  0xd4   :  { %255 = dma.done.wait [#allocation4], 16  }
  0xd5   :  { %256 = vsyncadd [#allocation4], 4294967280 }
  0xd6   :  { %188 = vsyncpa [#allocation3], 1 }
  0xd7   :  { %189 = vsyncpa [#allocation4], 1 }

</bundles_post_ra>
